<compile_context>
chip_gen: v7x
topology: tpu7x:2x2x1
jax: 0.10.0
libtpu: 0.0.40
codegen_flags: <defaults>
</compile_context>

<pallas_src>
import jax
import jax.numpy as jnp
from jax.experimental import pallas as pl
from jax.experimental.pallas import tpu as pltpu


def actor_kernel(s_ref, w1_ref, b1_ref, w2_ref, b2_ref, wh_ref, bh_ref, out_ref):
    x = s_ref[...].astype(jnp.bfloat16)                       # (TB, S)

    # Layer 1: bf16 MXU inputs, f32 accumulation, f32 bias + ReLU, bf16 store.
    h1 = jnp.dot(x, w1_ref[...], preferred_element_type=jnp.float32) + b1_ref[...]
    h1 = jnp.maximum(h1, 0.0).astype(jnp.bfloat16)            # F.relu

    # Layer 2.
    h2 = jnp.dot(h1, w2_ref[...], preferred_element_type=jnp.float32) + b2_ref[...]
    h2 = jnp.maximum(h2, 0.0).astype(jnp.bfloat16)            # F.relu

    # Fused heads: [mean | log_std] in one MXU pass + one output store.
    heads = jnp.dot(h2, wh_ref[...], preferred_element_type=jnp.float32) + bh_ref[...]

    action_dim = heads.shape[1] // 2
    col = jax.lax.broadcasted_iota(jnp.int32, heads.shape, 1)
    clipped = jnp.clip(heads, -20.0, 2.0)                     # torch.clamp(-20, 2)
    out_ref[...] = jnp.where(col < action_dim, heads, clipped).astype(out_ref.dtype)


def _select_batch_tile(B, batch_tile):
    """Pick the batch tile.

    Tiny batches get a single block covering the whole batch; otherwise pick an
    8-multiple tile giving an even (>=2) number of grid steps so the 'parallel'
    batch axis splits evenly across both TensorCores on v7x.
    """
    if B < 16:
        return B
    nb = max(2, pl.cdiv(B, batch_tile))
    if nb % 2:
        nb += 1
    tb = ((pl.cdiv(B, nb) + 7) // 8) * 8
    return min(tb, B)


def actor_forward(state, params, *, batch_tile=2048):
    """state: (B, state_dim) f32. Returns (mean, log_std), each (B, action_dim) f32."""
    B, S = state.shape
    H = params["w1"].shape[1]
    A2 = params["wh"].shape[1]          # 2 * action_dim
    A = A2 // 2

    TB = _select_batch_tile(B, batch_tile)
    nb = pl.cdiv(B, TB)                 # ragged last block handled by Pallas masking

    flops = 2 * B * (S * H + H * H + H * A2)
    weight_bytes = (S * H + H * H + H * A2) * 2 + (H + H + A2) * 4
    bytes_accessed = weight_bytes + B * S * 4 + B * A2 * 4

    # Rough VMEM footprint: double-buffered state/out tiles + resident weights
    # + in-body temporaries; only raise the scoped limit when it would matter.
    vmem_est = (2 * TB * S * 4 + 2 * TB * A2 * 4 + 2 * weight_bytes
                + 6 * TB * H * 4)
    cp_kwargs = dict(dimension_semantics=("parallel",))       # v7x: shard batch across TCs
    if vmem_est > 24 * 1024 * 1024:
        cp_kwargs["vmem_limit_bytes"] = min(int(vmem_est) + (8 << 20), 60 << 20)

    out = pl.pallas_call(
        actor_kernel,
        out_shape=jax.ShapeDtypeStruct((B, A2), jnp.float32),
        grid=(nb,),
        in_specs=[
            pl.BlockSpec((TB, S), lambda i: (i, 0)),     # state: tiled over B
            pl.BlockSpec((S, H), lambda i: (0, 0)),      # w1: resident
            pl.BlockSpec((1, H), lambda i: (0, 0)),      # b1
            pl.BlockSpec((H, H), lambda i: (0, 0)),      # w2: resident
            pl.BlockSpec((1, H), lambda i: (0, 0)),      # b2
            pl.BlockSpec((H, A2), lambda i: (0, 0)),     # fused head weights
            pl.BlockSpec((1, A2), lambda i: (0, 0)),     # fused head bias
        ],
        out_specs=pl.BlockSpec((TB, A2), lambda i: (i, 0)),
        compiler_params=pltpu.CompilerParams(**cp_kwargs),
        cost_estimate=pl.CostEstimate(
            flops=flops, transcendentals=0, bytes_accessed=bytes_accessed),
    )(state,
      params["w1"], params["b1"],
      params["w2"], params["b2"],
      params["wh"], params["bh"])

    mean = out[:, :A]
    log_std = out[:, A:]
    return mean, log_std


def init_actor_params(key, state_dim, action_dim, hidden=256):
    """Init mimicking PyTorch nn.Linear default U(-1/sqrt(fan_in), +1/sqrt(fan_in)).

    Weights are stored pre-transposed as (in, out) and cast to bf16; biases f32.
    The mean / log_std head weights+biases are concatenated along the output dim.
    """
    def linear(k, fan_in, fan_out):
        kw, kb = jax.random.split(k)
        bound = 1.0 / jnp.sqrt(jnp.float32(fan_in))
        w = jax.random.uniform(kw, (fan_in, fan_out), jnp.float32, -bound, bound)
        b = jax.random.uniform(kb, (1, fan_out), jnp.float32, -bound, bound)
        return w, b

    k1, k2, k3, k4 = jax.random.split(key, 4)
    w1, b1 = linear(k1, state_dim, hidden)
    w2, b2 = linear(k2, hidden, hidden)
    wm, bm = linear(k3, hidden, action_dim)
    ws, bs = linear(k4, hidden, action_dim)

    wh = jnp.concatenate([wm, ws], axis=1)   # (hidden, 2*action_dim) = [mean | log_std]
    bh = jnp.concatenate([bm, bs], axis=1)   # (1, 2*action_dim)

    return {
        "w1": w1.astype(jnp.bfloat16), "b1": b1,
        "w2": w2.astype(jnp.bfloat16), "b2": b2,
        "wh": wh.astype(jnp.bfloat16), "bh": bh,
    }


def actor_forward_ref(state, p):
    """Pure-JAX reference using the identical bf16-matmul / f32-accumulate recipe.

    Note: bf16 weights/activations deviate from a true f32 PyTorch Actor at the
    ~1e-3 relative level; acceptable for SAC and matched exactly by this ref.
    """
    h1 = jnp.dot(state.astype(jnp.bfloat16), p["w1"],
                 preferred_element_type=jnp.float32) + p["b1"]
    h1 = jnp.maximum(h1, 0.0).astype(jnp.bfloat16)
    h2 = jnp.dot(h1, p["w2"], preferred_element_type=jnp.float32) + p["b2"]
    h2 = jnp.maximum(h2, 0.0).astype(jnp.bfloat16)
    heads = jnp.dot(h2, p["wh"], preferred_element_type=jnp.float32) + p["bh"]
    A = heads.shape[1] // 2
    mean = heads[:, :A]
    log_std = jnp.clip(heads[:, A:], -20.0, 2.0)
    return mean, log_std


if __name__ == "__main__":
    # Small shapes consistent with the module: batch=2, state_dim=16, action_dim=8.
    B, STATE_DIM, ACTION_DIM = 2, 16, 8

    key = jax.random.PRNGKey(0)
    k_params, k_state = jax.random.split(key)
    params = init_actor_params(k_params, STATE_DIM, ACTION_DIM)
    state = jax.random.normal(k_state, (B, STATE_DIM), jnp.float32)

    mean, log_std = actor_forward(state, params)
    jax.block_until_ready((mean, log_std))

    mean_ref, log_std_ref = actor_forward_ref(state, params)
    assert mean.shape == (B, ACTION_DIM) and log_std.shape == (B, ACTION_DIM)
    assert jnp.allclose(mean, mean_ref, atol=1e-3, rtol=1e-3)
    assert jnp.allclose(log_std, log_std_ref, atol=1e-3, rtol=1e-3)
    assert bool(jnp.all(log_std >= -20.0)) and bool(jnp.all(log_std <= 2.0))

    # Exercise the multi-step (even) grid path with a larger, non-multiple batch
    # and the ragged boundary block (no wrapper-side padding copy).
    BIG = 1030
    state_big = jax.random.normal(jax.random.PRNGKey(1), (BIG, STATE_DIM), jnp.float32)
    mean_b, log_std_b = actor_forward(state_big, params)
    jax.block_until_ready((mean_b, log_std_b))
    mean_b_ref, log_std_b_ref = actor_forward_ref(state_big, params)
    assert mean_b.shape == (BIG, ACTION_DIM) and log_std_b.shape == (BIG, ACTION_DIM)
    assert jnp.allclose(mean_b, mean_b_ref, atol=1e-3, rtol=1e-3)
    assert jnp.allclose(log_std_b, log_std_b_ref, atol=1e-3, rtol=1e-3)

    # Also a batch > batch_tile to cover the nb>2 even-grid branch.
    HUGE = 4100
    state_huge = jax.random.normal(jax.random.PRNGKey(2), (HUGE, STATE_DIM), jnp.float32)
    mean_h, log_std_h = actor_forward(state_huge, params, batch_tile=1024)
    jax.block_until_ready((mean_h, log_std_h))
    mean_h_ref, log_std_h_ref = actor_forward_ref(state_huge, params)
    assert jnp.allclose(mean_h, mean_h_ref, atol=1e-3, rtol=1e-3)
    assert jnp.allclose(log_std_h, log_std_h_ref, atol=1e-3, rtol=1e-3)

    print("KERNEL_OK")
</pallas_src>

<mosaic_0001>
module attributes {stable_mosaic.version = 11 : i64} {
  func.func @actor_kernel(%arg0: i32, %arg1: memref<2x16xf32, #tpu.memory_space<vmem>>, %arg2: memref<16x256xbf16, #tpu.memory_space<vmem>>, %arg3: memref<1x256xf32, #tpu.memory_space<vmem>>, %arg4: memref<256x256xbf16, #tpu.memory_space<vmem>>, %arg5: memref<1x256xf32, #tpu.memory_space<vmem>>, %arg6: memref<256x16xbf16, #tpu.memory_space<vmem>>, %arg7: memref<1x16xf32, #tpu.memory_space<vmem>>, %arg8: memref<2x16xf32, #tpu.memory_space<vmem>>) attributes {dimension_semantics = [#tpu.dimension_semantics<parallel>], iteration_bounds = array<i64: 1>, scalar_prefetch = 0 : i64, scratch_operands = 0 : i64, tpu.core_type = #tpu.core_type<tc>, window_params = [{transform_indices = @transform_0, window_bounds = array<i64: 2, 16>}, {pipeline_mode = #tpu.pipeline_mode<synchronous>, transform_indices = @transform_1, window_bounds = array<i64: 16, 256>}, {pipeline_mode = #tpu.pipeline_mode<synchronous>, transform_indices = @transform_2, window_bounds = array<i64: 1, 256>}, {pipeline_mode = #tpu.pipeline_mode<synchronous>, transform_indices = @transform_3, window_bounds = array<i64: 256, 256>}, {pipeline_mode = #tpu.pipeline_mode<synchronous>, transform_indices = @transform_4, window_bounds = array<i64: 1, 256>}, {pipeline_mode = #tpu.pipeline_mode<synchronous>, transform_indices = @transform_5, window_bounds = array<i64: 256, 16>}, {pipeline_mode = #tpu.pipeline_mode<synchronous>, transform_indices = @transform_6, window_bounds = array<i64: 1, 16>}, {transform_indices = @transform_7, window_bounds = array<i64: 2, 16>}]} {
    %c0 = arith.constant 0 : index
    %c0_0 = arith.constant 0 : index
    %0 = vector.load %arg1[%c0, %c0_0] : memref<2x16xf32, #tpu.memory_space<vmem>>, vector<2x16xf32>
    %1 = arith.truncf %0 : vector<2x16xf32> to vector<2x16xbf16>
    %c0_1 = arith.constant 0 : index
    %c0_2 = arith.constant 0 : index
    %2 = vector.load %arg2[%c0_1, %c0_2] : memref<16x256xbf16, #tpu.memory_space<vmem>>, vector<16x256xbf16>
    %cst = arith.constant dense<0.000000e+00> : vector<2x256xf32>
    %3 = tpu.matmul %1, %2, %cst {dimension_numbers = #tpu.dot_dimension_numbers<[1], [0], [0], [1], [0, 0, 1, 1], [], []>} : vector<2x16xbf16>, vector<16x256xbf16>, vector<2x256xf32> -> vector<2x256xf32>
    %c0_3 = arith.constant 0 : index
    %c0_4 = arith.constant 0 : index
    %4 = vector.load %arg3[%c0_3, %c0_4] : memref<1x256xf32, #tpu.memory_space<vmem>>, vector<1x256xf32>
    %5 = vector.broadcast %4 : vector<1x256xf32> to vector<2x256xf32>
    %6 = arith.addf %3, %5 : vector<2x256xf32>
    %cst_5 = arith.constant 0.000000e+00 : f32
    %7 = vector.broadcast %cst_5 : f32 to vector<2x256xf32>
    %8 = arith.maximumf %6, %7 : vector<2x256xf32>
    %9 = arith.truncf %8 : vector<2x256xf32> to vector<2x256xbf16>
    %c0_6 = arith.constant 0 : index
    %c0_7 = arith.constant 0 : index
    %10 = vector.load %arg4[%c0_6, %c0_7] : memref<256x256xbf16, #tpu.memory_space<vmem>>, vector<256x256xbf16>
    %cst_8 = arith.constant dense<0.000000e+00> : vector<2x256xf32>
    %11 = tpu.matmul %9, %10, %cst_8 {dimension_numbers = #tpu.dot_dimension_numbers<[1], [0], [0], [1], [0, 0, 1, 1], [], []>} : vector<2x256xbf16>, vector<256x256xbf16>, vector<2x256xf32> -> vector<2x256xf32>
    %c0_9 = arith.constant 0 : index
    %c0_10 = arith.constant 0 : index
    %12 = vector.load %arg5[%c0_9, %c0_10] : memref<1x256xf32, #tpu.memory_space<vmem>>, vector<1x256xf32>
    %13 = vector.broadcast %12 : vector<1x256xf32> to vector<2x256xf32>
    %14 = arith.addf %11, %13 : vector<2x256xf32>
    %cst_11 = arith.constant 0.000000e+00 : f32
    %15 = vector.broadcast %cst_11 : f32 to vector<2x256xf32>
    %16 = arith.maximumf %14, %15 : vector<2x256xf32>
    %17 = arith.truncf %16 : vector<2x256xf32> to vector<2x256xbf16>
    %c0_12 = arith.constant 0 : index
    %c0_13 = arith.constant 0 : index
    %18 = vector.load %arg6[%c0_12, %c0_13] : memref<256x16xbf16, #tpu.memory_space<vmem>>, vector<256x16xbf16>
    %cst_14 = arith.constant dense<0.000000e+00> : vector<2x16xf32>
    %19 = tpu.matmul %17, %18, %cst_14 {dimension_numbers = #tpu.dot_dimension_numbers<[1], [0], [0], [1], [0, 0, 1, 1], [], []>} : vector<2x256xbf16>, vector<256x16xbf16>, vector<2x16xf32> -> vector<2x16xf32>
    %c0_15 = arith.constant 0 : index
    %c0_16 = arith.constant 0 : index
    %20 = vector.load %arg7[%c0_15, %c0_16] : memref<1x16xf32, #tpu.memory_space<vmem>>, vector<1x16xf32>
    %21 = vector.broadcast %20 : vector<1x16xf32> to vector<2x16xf32>
    %22 = arith.addf %19, %21 : vector<2x16xf32>
    %23 = tpu.iota {dimensions = array<i32: 1>} : vector<2x16xi32>
    %cst_17 = arith.constant -2.000000e+01 : f32
    %cst_18 = arith.constant 2.000000e+00 : f32
    %24 = vector.broadcast %cst_17 : f32 to vector<2x16xf32>
    %25 = arith.maximumf %24, %22 : vector<2x16xf32>
    %26 = vector.broadcast %cst_18 : f32 to vector<2x16xf32>
    %27 = arith.minimumf %26, %25 : vector<2x16xf32>
    %c8_i32 = arith.constant 8 : i32
    %28 = vector.broadcast %c8_i32 : i32 to vector<2x16xi32>
    %29 = arith.cmpi slt, %23, %28 : vector<2x16xi32>
    %30 = arith.select %29, %22, %27 : vector<2x16xi1>, vector<2x16xf32>
    %c0_19 = arith.constant 0 : index
    %c0_20 = arith.constant 0 : index
    %31 = vector.load %arg8[%c0_19, %c0_20] : memref<2x16xf32, #tpu.memory_space<vmem>>, vector<2x16xf32>
    tpu.vector_store %arg8[%c0_19, %c0_20], %30 {strides = array<i32>} : memref<2x16xf32, #tpu.memory_space<vmem>>, vector<2x16xf32>,
    return
  }
  func.func @transform_0(%arg0: i32) -> (i32, i32) {
    %c0_i32 = arith.constant 0 : i32
    %c0_i32_0 = arith.constant 0 : i32
    return %arg0, %c0_i32 : i32, i32
  }
  func.func @transform_1(%arg0: i32) -> (i32, i32) {
    %c0_i32 = arith.constant 0 : i32
    %c0_i32_0 = arith.constant 0 : i32
    %c0_i32_1 = arith.constant 0 : i32
    return %c0_i32, %c0_i32_0 : i32, i32
  }
  func.func @transform_2(%arg0: i32) -> (i32, i32) {
    %c0_i32 = arith.constant 0 : i32
    %c0_i32_0 = arith.constant 0 : i32
    %c0_i32_1 = arith.constant 0 : i32
    return %c0_i32, %c0_i32_0 : i32, i32
  }
  func.func @transform_3(%arg0: i32) -> (i32, i32) {
    %c0_i32 = arith.constant 0 : i32
    %c0_i32_0 = arith.constant 0 : i32
    %c0_i32_1 = arith.constant 0 : i32
    return %c0_i32, %c0_i32_0 : i32, i32
  }
  func.func @transform_4(%arg0: i32) -> (i32, i32) {
    %c0_i32 = arith.constant 0 : i32
    %c0_i32_0 = arith.constant 0 : i32
    %c0_i32_1 = arith.constant 0 : i32
    return %c0_i32, %c0_i32_0 : i32, i32
  }
  func.func @transform_5(%arg0: i32) -> (i32, i32) {
    %c0_i32 = arith.constant 0 : i32
    %c0_i32_0 = arith.constant 0 : i32
    %c0_i32_1 = arith.constant 0 : i32
    return %c0_i32, %c0_i32_0 : i32, i32
  }
  func.func @transform_6(%arg0: i32) -> (i32, i32) {
    %c0_i32 = arith.constant 0 : i32
    %c0_i32_0 = arith.constant 0 : i32
    %c0_i32_1 = arith.constant 0 : i32
    return %c0_i32, %c0_i32_0 : i32, i32
  }
  func.func @transform_7(%arg0: i32) -> (i32, i32) {
    %c0_i32 = arith.constant 0 : i32
    %c0_i32_0 = arith.constant 0 : i32
    return %arg0, %c0_i32 : i32, i32
  }
}

</mosaic_0001>

<bundles_post_ra>
// kernel: tpu_custom_call.1
= control target key start
LH: loop header
LB: loop body
LE: loop exit
PB: predicated region body
PF: predicated region fallthrough
CT: control target
= control target key end

     0   :  { %12 = vsyncpa [#allocation3], 0  ;;  %s893_s0 = inlined_call_operand.vmem [shape: f32[2,16], index: 0, kind: input, shape index: {}]   ;;  %s894_s1 = inlined_call_operand.vmem [shape: bf16[16,256], index: 1, kind: input, shape index: {}]   ;;  %s895_s2 = inlined_call_operand.vmem [shape: f32[1,256], index: 2, kind: input, shape index: {}]   ;;  %s896_s3 = inlined_call_operand.hbm [shape: bf16[256,256], index: 3, kind: input, shape index: {}]   ;;  %s897_s4 = inlined_call_operand.vmem [shape: f32[1,256], index: 4, kind: input, shape index: {}]   ;;  %s898_s5 = inlined_call_operand.vmem [shape: bf16[256,16], index: 5, kind: input, shape index: {}]   ;;  %s899_s6 = inlined_call_operand.vmem [shape: f32[1,16], index: 6, kind: input, shape index: {}]   ;;  %s900_s7 = inlined_call_operand.hbm [shape: f32[2,16], index: 7, kind: output, shape index: {}]  }
   0x1   :  { %13 = vsyncpa [#allocation4], 0  ;;  %s758_s24 = smov [#allocation2]   ;;  %s710_s28 = scalar_lea.hbm %s896_s3, 4096 }
   0x2   :  { %s25_s25 = sshll.u32 %s758_s24, 4  ;;  %p711_p0 = scmp.ne.s32.totalorder %s896_s3, %s710_s28  ;;  %s26_s25 = int_to_ptr.vmem [resolvable:$true] %s25_s25 }
   0x3   :  { %p714_p1 = scmp.lt.u32.totalorder %s710_s28, %s896_s3 }
   0x5   :  { %p716_p2 = pnand %p714_p1, %p711_p0 }
   0x7   :  { %719 = shalt.err (!%p716_p2)
}
   0x8   :  { %s720_s10 = scalar_lea.vmem %s26_s25, 4096  ;;  %p725_p4 = scmp.lt.s32.totalorder %s26_s25, %s26_s25 }
   0x9   :  { %p721_p3 = scmp.ne.s32.totalorder %s26_s25, %s720_s10  ;;  %p726_p5 = scmp.lt.s32.totalorder %s720_s10, %s720_s10 }
   0xb   :  { %p727_p6 = por %p726_p5, %p725_p4 }
   0xd   :  { %p728_p7 = pnand %p727_p6, %p721_p3 }
   0xf   :  { %731 = shalt.err (!%p728_p7)
}
  0x10   :  { %s759_s11 = smov 128   ;;  %s760_s12 = smov 8  }
  0x11   :  { %31 = dma.hbm_to_vmem [thread:$0]  %s896_s3, 4096, %s26_s25, [#allocation3], %s759_s11, %s759_s11, %s760_s12  }
  0x12   :  { %754 = dma.done.wait [#allocation3], 4096  }
  0x13   :  { %755 = vsyncadd [#allocation3], 4294963200  ;;  %v761_v0 = vmov 0   ;;  %v643_v1 = vld [vmem:[%s894_s1 + $0x4] ss:$8 sps:$4 sm:$0xff]   ;;  %vm68_vm0 = vcmask 130048   ;;  %v48_v49 = vlaneseq }
  0x14   :  { %104 = vmatprep.mubr.bf16.mxu0 %v761_v0  ;;  %v645_v2 = vld [vmem:[%s894_s1] ss:$8 sps:$4 sm:$0xff]   ;;  %72 = vmatprep.subr.bf16.mxu0 %v643_v1  ;;  %v646_v5 = vld [vmem:[#allocation2 + $0x4] ss:$8 sps:$4 sm:$0xff]   ;;  %v649_v7 = vld [vmem:[#allocation2 + $0x14] ss:$8 sps:$4 sm:$0xff]  }
  0x15   :  { %v42_v3 = vld [vmem:[%s893_s0] sm:$0x3]  ;;  %73 = vmatpush1.bf16.msra.mxu0 %v645_v2  ;;  %321 = vmatprep.subr.bf16.mxu1 %v646_v5  ;;  %v651_v8 = vld [vmem:[#allocation2 + $0x10] ss:$8 sps:$4 sm:$0xff]   ;;  %v652_v9 = vld [vmem:[#allocation2 + $0x24] ss:$8 sps:$4 sm:$0xff]  }
  0x16   :  { %v43_v4 = vpack.c.bf16 %v42_v3, %v42_v3  ;;  %v648_v6 = vld [vmem:[#allocation2] ss:$8 sps:$4 sm:$0xff]   ;;  %v655_v11 = vld [vmem:[#allocation2 + $0x34] ss:$8 sps:$4 sm:$0xff]   ;;  %v657_v12 = vld [vmem:[#allocation2 + $0x30] ss:$8 sps:$4 sm:$0xff]  }
  0x17   :  { %322 = vmatpush1.bf16.msra.mxu1 %v648_v6  ;;  %v654_v10 = vld [vmem:[#allocation2 + $0x20] ss:$8 sps:$4 sm:$0xff]   ;;  %v658_v13 = vld [vmem:[#allocation2 + $0x44] ss:$8 sps:$4 sm:$0xff]   ;;  %v661_v15 = vld [vmem:[#allocation2 + $0x54] ss:$8 sps:$4 sm:$0xff]  }
  0x18   :  { %566 = vmatmul.mubr.msk.bf16.vlgmr.msra.gmra.mrb[0].mxu0 %vm68_vm0, %v43_v4  ;;  %323 = vmatprep.subr.bf16.mxu1 %v649_v7  ;;  %v660_v14 = vld [vmem:[#allocation2 + $0x40] ss:$8 sps:$4 sm:$0xff]   ;;  %v663_v16 = vld [vmem:[#allocation2 + $0x50] ss:$8 sps:$4 sm:$0xff]   ;;  %v664_v17 = vld [vmem:[#allocation2 + $0x64] ss:$8 sps:$4 sm:$0xff]  }
  0x19   :  { %v666_v18 = vld [vmem:[#allocation2 + $0x60] ss:$8 sps:$4 sm:$0xff]   ;;  %v667_v19 = vld [vmem:[#allocation2 + $0x74] ss:$8 sps:$4 sm:$0xff]   ;;  %v669_v20 = vld [vmem:[#allocation2 + $0x70] ss:$8 sps:$4 sm:$0xff]  }
  0x1a   :  { %v670_v21 = vld [vmem:[#allocation2 + $0x84] ss:$8 sps:$4 sm:$0xff]   ;;  %v672_v22 = vld [vmem:[#allocation2 + $0x80] ss:$8 sps:$4 sm:$0xff]   ;;  %v673_v23 = vld [vmem:[#allocation2 + $0x94] ss:$8 sps:$4 sm:$0xff]  }
  0x1b   :  { %324 = vmatpush1.bf16.msra.mxu1 %v651_v8  ;;  %v675_v24 = vld [vmem:[#allocation2 + $0x90] ss:$8 sps:$4 sm:$0xff]   ;;  %v676_v25 = vld [vmem:[#allocation2 + $0xa4] ss:$8 sps:$4 sm:$0xff]   ;;  %v678_v26 = vld [vmem:[#allocation2 + $0xa0] ss:$8 sps:$4 sm:$0xff]  }
  0x1c   :  { %325 = vmatprep.subr.bf16.mxu1 %v652_v9  ;;  %v679_v27 = vld [vmem:[#allocation2 + $0xb4] ss:$8 sps:$4 sm:$0xff]   ;;  %v681_v28 = vld [vmem:[#allocation2 + $0xb0] ss:$8 sps:$4 sm:$0xff]   ;;  %v682_v29 = vld [vmem:[#allocation2 + $0xc4] ss:$8 sps:$4 sm:$0xff]  }
  0x1d   :  { %v684_v30 = vld [vmem:[#allocation2 + $0xc0] ss:$8 sps:$4 sm:$0xff]   ;;  %v685_v31 = vld [vmem:[#allocation2 + $0xd4] ss:$8 sps:$4 sm:$0xff]   ;;  %v687_v32 = vld [vmem:[#allocation2 + $0xd0] ss:$8 sps:$4 sm:$0xff]  }
  0x1e   :  { %v688_v33 = vld [vmem:[#allocation2 + $0xe4] ss:$8 sps:$4 sm:$0xff]   ;;  %v690_v34 = vld [vmem:[#allocation2 + $0xe0] ss:$8 sps:$4 sm:$0xff]   ;;  %v691_v35 = vld [vmem:[#allocation2 + $0xf4] ss:$8 sps:$4 sm:$0xff]  }
  0x1f   :  { %326 = vmatpush1.bf16.msra.mxu1 %v654_v10  ;;  %v693_v36 = vld [vmem:[#allocation2 + $0xf0] ss:$8 sps:$4 sm:$0xff]   ;;  %v694_v37 = vld [vmem:[%s898_s5 + $0x40] sm:$0xff]   ;;  %v696_v39 = vld [vmem:[%s898_s5 + $0x48] sm:$0xff]   ;;  %v49_v50 = vshrl.u32 %v48_v49, 7  ;;  %vm547_vm2 = vcmask 123904  }
  0x20   :  { %327 = vmatprep.subr.bf16.mxu1 %v655_v11  ;;  %v695_v38 = vld [vmem:[%s898_s5] sm:$0xff]   ;;  %616 = vmatprep.subr.bf16.mxu0 %v694_v37  ;;  %v697_v40 = vld [vmem:[%s898_s5 + $0x8] sm:$0xff]   ;;  %v698_v41 = vld [vmem:[%s898_s5 + $0x50] sm:$0xff]  }
  0x21   :  { %617 = vmatpush3.bf16.msra.mxu0 %v695_v38  ;;  %v699_v42 = vld [vmem:[%s898_s5 + $0x10] sm:$0xff]   ;;  %v700_v43 = vld [vmem:[%s898_s5 + $0x58] sm:$0xff]   ;;  %v702_v45 = vld [vmem:[%s898_s5 + $0x60] sm:$0xff]   ;;  %v50_v51 = vsub.s32 0, %v49_v50  ;;  %v54_v53 = vsub.s32 1, %v49_v50 }
  0x22   :  { %618 = vmatprep.subr.bf16.mxu0 %v696_v39  ;;  %v701_v44 = vld [vmem:[%s898_s5 + $0x18] sm:$0xff]   ;;  %v703_v46 = vld [vmem:[%s898_s5 + $0x20] sm:$0xff]   ;;  %v704_v47 = vld [vmem:[%s898_s5 + $0x68] sm:$0xff]  }
  0x23   :  { %328 = vmatpush1.bf16.msra.mxu1 %v657_v12  ;;  %v705_v48 = vld [vmem:[%s898_s5 + $0x28] sm:$0xff]   ;;  %v46_v52 = vld [vmem:[%s895_s2] sm:$0x3]  ;;  %v706_v2 = vld [vmem:[%s898_s5 + $0x70] sm:$0xff]  }
  0x24   :  { %329 = vmatprep.subr.bf16.mxu1 %v658_v13  ;;  %v51_v54 = vrot.slane %v46_v52, %v50_v51  ;;  %v55_v55 = vrot.slane %v46_v52, %v54_v53  ;;  %v707_v3 = vld [vmem:[%s898_s5 + $0x30] sm:$0xff]   ;;  %v708_v4 = vld [vmem:[%s898_s5 + $0x78] sm:$0xff]   ;;  %v149_v6 = vld [vmem:[%s897_s4] sm:$0x3]  ;;  %s762_s4 = smov [#allocation5]  }
  0x25   :  { %619 = vmatpush3.bf16.msra.mxu0 %v697_v40  ;;  %v709_v5 = vld [vmem:[%s898_s5 + $0x38] sm:$0xff]   ;;  %v154_v7 = vrot.slane %v149_v6, %v50_v51  ;;  %v158_v8 = vrot.slane %v149_v6, %v54_v53  ;;  %s555_s28 = sshll.u32 %s762_s4, 4  ;;  %s556_s28 = int_to_ptr.vmem [resolvable:$true] %s555_s28 }
  0x26   :  { %620 = vmatprep.subr.bf16.mxu0 %v698_v41  ;;  %s732_s29 = scalar_lea.vmem %s556_s28, 32  ;;  %p737_p9 = scmp.lt.s32.totalorder %s556_s28, %s556_s28 }
  0x27   :  { %330 = vmatpush1.bf16.msra.mxu1 %v660_v14  ;;  %p733_p8 = scmp.ne.s32.totalorder %s556_s28, %s732_s29  ;;  %p738_p10 = scmp.lt.s32.totalorder %s732_s29, %s732_s29 }
  0x28   :  { %331 = vmatprep.subr.bf16.mxu1 %v661_v15 }
  0x29   :  { %621 = vmatpush3.bf16.msra.mxu0 %v699_v42  ;;  %p739_p11 = por %p738_p10, %p737_p9 }
  0x2a   :  { %622 = vmatprep.subr.bf16.mxu0 %v700_v43 }
  0x2b   :  { %332 = vmatpush1.bf16.msra.mxu1 %v663_v16  ;;  %p740_p12 = pnand %p739_p11, %p733_p8 }
  0x2c   :  { %333 = vmatprep.subr.bf16.mxu1 %v664_v17 }
  0x2d   :  { %623 = vmatpush3.bf16.msra.mxu0 %v701_v44 }
  0x2e   :  { %624 = vmatprep.subr.bf16.mxu0 %v702_v45 }
  0x2f   :  { %334 = vmatpush1.bf16.msra.mxu1 %v666_v18 }
  0x30   :  { %335 = vmatprep.subr.bf16.mxu1 %v667_v19 }
  0x31   :  { %625 = vmatpush3.bf16.msra.mxu0 %v703_v46 }
  0x32   :  { %626 = vmatprep.subr.bf16.mxu0 %v704_v47 }
  0x33   :  { %336 = vmatpush1.bf16.msra.mxu1 %v669_v20  ;;  %v599_v20 = vld [vmem:[%s899_s6] ss:$0 sm:$0xff] }
  0x34   :  { %337 = vmatprep.subr.bf16.mxu1 %v670_v21 }
  0x35   :  { %627 = vmatpush3.bf16.msra.mxu0 %v705_v48 }
  0x36   :  { %628 = vmatprep.subr.bf16.mxu0 %v706_v2 }
  0x37   :  { %338 = vmatpush1.bf16.msra.mxu1 %v672_v22 }
  0x38   :  { %339 = vmatprep.subr.bf16.mxu1 %v673_v23 }
  0x39   :  { %629 = vmatpush3.bf16.msra.mxu0 %v707_v3 }
  0x3a   :  { %630 = vmatprep.subr.bf16.mxu0 %v708_v4 }
  0x3b   :  { %340 = vmatpush1.bf16.msra.mxu1 %v675_v24 }
  0x3c   :  { %341 = vmatprep.subr.bf16.mxu1 %v676_v25  ;;  %v542_v25 = vand.u32 127, %v48_v49 }
  0x3d   :  { %631 = vmatpush3.bf16.msra.mxu0 %v709_v5 }
  0x3e   :  { %vm545_vm1 = vcmp.lt.s32.totalorder %v542_v25, 8 }
  0x3f   :  { %342 = vmatpush1.bf16.msra.mxu1 %v678_v26 }
  0x40   :  { %343 = vmatprep.subr.bf16.mxu1 %v679_v27 }
  0x43   :  { %344 = vmatpush1.bf16.msra.mxu1 %v681_v28 }
  0x44   :  { %345 = vmatprep.subr.bf16.mxu1 %v682_v29 }
  0x47   :  { %346 = vmatpush1.bf16.msra.mxu1 %v684_v30 }
  0x48   :  { %347 = vmatprep.subr.bf16.mxu1 %v685_v31 }
  0x4b   :  { %348 = vmatpush1.bf16.msra.mxu1 %v687_v32 }
  0x4c   :  { %349 = vmatprep.subr.bf16.mxu1 %v688_v33 }
  0x4f   :  { %350 = vmatpush1.bf16.msra.mxu1 %v690_v34 }
  0x50   :  { %351 = vmatprep.subr.bf16.mxu1 %v691_v35 }
  0x53   :  { %352 = vmatpush1.bf16.msra.mxu1 %v693_v36 }
  0xeb   :  { %v106_v56 = vpop.f32.mrb[0].mxu0 }
  0xec   :  { %v107_v57 = vadd.f32 %v106_v56, %v51_v54  ;;  %v108_v58 = vpop.f32.mrb[1].mxu0 }
  0xed   :  { %v109_v59 = vadd.f32 %v108_v58, %v55_v55  ;;  %v110_v60 = vpop.f32.mrb[2].mxu0 }
  0xee   :  { %v113_v61 = vmax.f32 %v107_v57, 0.0  ;;  %v111_v62 = vpop.f32.mrb[3].mxu0 }
  0xef   :  { %v114_v63 = vmax.f32 %v109_v59, 0.0 }
  0xf0   :  { %v115_v1 = vpack.c.bf16 %v113_v61, %v113_v61 }
  0xf1   :  { %v116_v0 = vpack.c.bf16 %v114_v63, %v114_v63 }
  0xf3   :  { %353 = vmatprep.mubr.bf16.mxu1 %v116_v0 }
  0xf4   :  { %354 = vmatmul.mubr.bf16.vlgmr.msra.gmra.mrb[0].mxu1 %v115_v1 }
 0x1c7   :  { %v355_v9 = vpop.f32.mrb[0].mxu1 }
 0x1c8   :  { %v356_v10 = vadd.f32 %v355_v9, %v154_v7  ;;  %v357_v11 = vpop.f32.mrb[1].mxu1 }
 0x1c9   :  { %v358_v12 = vadd.f32 %v357_v11, %v158_v8  ;;  %v359_v13 = vpop.f32.mrb[2].mxu1 }
 0x1ca   :  { %v362_v14 = vmax.f32 %v356_v10, 0.0  ;;  %v360_v15 = vpop.f32.mrb[3].mxu1 }
 0x1cb   :  { %v363_v16 = vmax.f32 %v358_v12, 0.0 }
 0x1cc   :  { %v364_v18 = vpack.c.bf16 %v362_v14, %v362_v14 }
 0x1cd   :  { %v365_v17 = vpack.c.bf16 %v363_v16, %v363_v16 }
 0x1cf   :  { %533 = vmatprep.mubr.bf16.mxu0 %v365_v17 }
 0x1d0   :  { %534 = vmatmul.mubr.bf16.vlgmr.msra.gmra.mrb[4].mxu0 %v364_v18 }
 0x2a3   :  { %v632_v19 = vpop.f32.mrb[4].mxu0 }
 0x2a4   :  { %v633_v21 = vpop.f32.mrb[5].mxu0 }
 0x2a5   :  { %v634_v22 = vadd.f32 %v633_v21, %v632_v19  ;;  %v635_v23 = vpop.f32.mrb[6].mxu0 }
 0x2a6   :  { %v636_v24 = vpop.f32.mrb[7].mxu0 }
 0x2a7   :  { %v536_v26 = vadd.f32 %v634_v22, %v599_v20 }
 0x2a9   :  { %v543_v27 = vmax.f32 %v536_v26, -20.0 }
 0x2ab   :  { %v544_v28 = vmin.f32 %v543_v27, 2.0 }
 0x2ad   :  { %v546_v29 = vsel %vm545_vm1, %v536_v26, %v544_v28 }
 0x2ae   :  { %548 = vst.msk [vmem:[#allocation5] sm:$0x3] %vm547_vm2, %v546_v29 }
 0x2af   :  { %743 = shalt.err (!%p740_p12)
}
 0x2b0   :  { %s744_s8 = scalar_lea.hbm %s900_s7, 32 }
 0x2b1   :  { %p745_p13 = scmp.ne.s32.totalorder %s900_s7, %s744_s8  ;;  %p748_p0 = scmp.lt.u32.totalorder %s744_s8, %s900_s7 }
 0x2b3   :  { %p750_p1 = pnand %p748_p0, %p745_p13 }
 0x2b5   :  { %753 = shalt.err (!%p750_p1)
}
 0x2b6   :  { %558 = dma.vmem_to_hbm [thread:$0]  %s556_s28, 32, %s900_s7, [#allocation4]  }
 0x2b7   :  { %756 = dma.done.wait [#allocation4], 32  }
 0x2b8   :  { %757 = vsyncadd [#allocation4], 4294967264 }
 0x2b9   :  { %562 = vsyncpa [#allocation3], 1 }
 0x2ba   :  { %563 = vsyncpa [#allocation4], 1 }

</bundles_post_ra>
